<compile_context>
chip_gen: v5e
topology: v5e:2x2
jax: 0.10.0
libtpu: 0.0.40
codegen_flags: <defaults>
</compile_context>

<pallas_src>
import jax
import jax.numpy as jnp
import numpy as np
from jax import lax
from jax.experimental import pallas as pl
from jax.experimental.pallas import tpu as pltpu


def _round_up(v, m):
    return ((v + m - 1) // m) * m


# --------------------------- tiled linear (matmul) --------------------------- #

def _matmul_kernel(x_ref, w_ref, o_ref, acc_ref):
    # x_ref: (tm, tk), w_ref: (tk, tn), o_ref: (tm, tn), acc_ref: (tm, tn) f32
    @pl.when(pl.program_id(2) == 0)
    def _():
        acc_ref[...] = jnp.zeros_like(acc_ref)

    # bf16 operands, f32 accumulation: hits the rated MXU path on v5e/v6e/v7x.
    acc_ref[...] += jnp.dot(
        x_ref[...].astype(jnp.bfloat16),
        w_ref[...].astype(jnp.bfloat16),
        preferred_element_type=jnp.float32,
    )

    @pl.when(pl.program_id(2) == pl.num_programs(2) - 1)
    def _():
        o_ref[...] = acc_ref[...].astype(o_ref.dtype)


def linear(x, w, *, tm=512, tn=512, tk_max=1024):
    """x: (M, K), w: (K, N) -> (M, N). Tiled, pipelined MXU matmul."""
    M, K = x.shape
    K2, N = w.shape
    assert K == K2

    # --- K tiling: pick tk that divides K exactly (no pad copies, no wasted
    # MACs).  The K axis is the contraction, so it must never read OOB.
    xp, wp = x, w
    if K <= tk_max:
        tk = K                      # block == full dim is always layout-legal
        Kp = K
    else:
        tk = 0
        for cand in (1024, 896, 768, 640, 512, 384, 256, 128):
            if K % cand == 0:
                tk = cand
                break
        if tk:
            Kp = K
        else:
            # Rare fallback (K not a multiple of 128): pad K once.
            tk = 512
            Kp = _round_up(K, tk)
            xp = jnp.pad(x, ((0, 0), (0, Kp - K)))
            wp = jnp.pad(w, ((0, Kp - K), (0, 0)))

    # --- M / N tiling: full-dim block for small problems, 512 tiles + cdiv
    # grid otherwise.  Boundary blocks read garbage only in rows/cols that are
    # clipped on the output write, so no padding copies are needed.
    tm_eff = M if M <= tm else tm           # 512 is a multiple of 8
    tn_eff = N if N <= tn else tn           # 512 is a multiple of 128

    grid = (pl.cdiv(M, tm_eff), pl.cdiv(N, tn_eff), Kp // tk)
    itemsize = jnp.dtype(x.dtype).itemsize
    cost = pl.CostEstimate(
        flops=2 * M * N * K,
        transcendentals=0,
        bytes_accessed=(M * K + K * N + M * N) * itemsize,
    )

    return pl.pallas_call(
        _matmul_kernel,
        out_shape=jax.ShapeDtypeStruct((M, N), x.dtype),
        grid=grid,
        in_specs=[
            pl.BlockSpec((tm_eff, tk), lambda i, j, k: (i, k)),
            pl.BlockSpec((tk, tn_eff), lambda i, j, k: (k, j)),
        ],
        out_specs=pl.BlockSpec((tm_eff, tn_eff), lambda i, j, k: (i, j)),
        scratch_shapes=[pltpu.VMEM((tm_eff, tn_eff), jnp.float32)],
        compiler_params=pltpu.CompilerParams(
            dimension_semantics=("parallel", "parallel", "arbitrary"),
            # Working set at 512/512/1024 tiles is ~11 MiB; 48 MiB leaves
            # headroom while staying under v7x's 64 MiB physical VMEM.
            vmem_limit_bytes=48 * 1024 * 1024,
        ),
        cost_estimate=cost,
    )(xp, wp)


# --------------------------- multi-head attention ---------------------------- #

def _make_attn_kernel(heads, dim_head, scale, heads_per_store):
    def _attn_kernel(q_ref, k_ref, v_ref, o_ref):
        # q_ref: (1, tq, inner)  k_ref/v_ref: (1, N, inner)  o_ref: (1, tq, inner)
        for g in range(0, heads, heads_per_store):
            group = range(g, min(g + heads_per_store, heads))
            outs = []
            for h in group:
                base = h * dim_head
                # Scale applied to q (tq x Dh) instead of the tq x N scores.
                q = (q_ref[0, :, base:base + dim_head] * scale).astype(jnp.bfloat16)
                k = k_ref[0, :, base:base + dim_head].astype(jnp.bfloat16)
                v = v_ref[0, :, base:base + dim_head].astype(jnp.bfloat16)

                # q @ k^T via transposed-RHS contraction; f32 scores.
                s = lax.dot_general(
                    q, k, (((1,), (1,)), ((), ())),
                    preferred_element_type=jnp.float32,
                )
                m = jnp.max(s, axis=-1, keepdims=True)
                p = jnp.exp(s - m)
                l = jnp.sum(p, axis=-1, keepdims=True)
                attn = (p / l).astype(jnp.bfloat16)   # exact normalization

                outs.append(jnp.dot(attn, v, preferred_element_type=jnp.float32))

            chunk = outs[0] if len(outs) == 1 else jnp.concatenate(outs, axis=-1)
            start = g * dim_head
            # Lane-dense (>=128-wide when dim_head divides 128) store per group;
            # bounds live ranges instead of keeping all heads in vregs.
            o_ref[0, :, start:start + chunk.shape[-1]] = chunk.astype(o_ref.dtype)

    return _attn_kernel


def attention_core(qkv, *, heads, dim_head, scale, tq=256):
    """qkv: (B, N, 3*heads*dim_head) -> (B, N, heads*dim_head), 'b n (h d)'."""
    B, N, three_inner = qkv.shape
    inner = heads * dim_head
    assert three_inner == 3 * inner
    # Per-operand blocks along the last dim require lane alignment.
    assert inner % 128 == 0, "heads*dim_head must be a multiple of 128"

    if N <= tq:
        tq = N                      # block == full dim is always layout-legal
    # else: tq stays 256 (multiple of 8); ragged last query tile is clipped on
    # write, so no padding is needed.

    if dim_head < 128 and 128 % dim_head == 0:
        heads_per_store = min(heads, 128 // dim_head)
    else:
        heads_per_store = 1

    itemsize = jnp.dtype(qkv.dtype).itemsize
    cost = pl.CostEstimate(
        flops=4 * B * heads * N * N * dim_head,        # QK^T + P@V
        transcendentals=B * heads * N * N,             # exp
        bytes_accessed=(B * N * three_inner + B * N * inner) * itemsize,
    )

    return pl.pallas_call(
        _make_attn_kernel(heads, dim_head, scale, heads_per_store),
        out_shape=jax.ShapeDtypeStruct((B, N, inner), qkv.dtype),
        grid=(B, pl.cdiv(N, tq)),
        in_specs=[
            # Q tile moves with the query-grid axis.
            pl.BlockSpec((1, tq, inner), lambda b, i: (b, i, 0)),
            # K / V blocks: block index constant in i -> stay resident in VMEM.
            pl.BlockSpec((1, N, inner), lambda b, i: (b, 0, 1)),
            pl.BlockSpec((1, N, inner), lambda b, i: (b, 0, 2)),
        ],
        out_specs=pl.BlockSpec((1, tq, inner), lambda b, i: (b, i, 0)),
        compiler_params=pltpu.CompilerParams(
            dimension_semantics=("parallel", "parallel"),
            vmem_limit_bytes=48 * 1024 * 1024,
        ),
        cost_estimate=cost,
    )(qkv, qkv, qkv)


# ------------------------------ module wrapper ------------------------------- #

def attention_forward(x, w_qkv, w_out, *, heads, dim_head):
    """Forward pass of the Attention module.

    x:     (B, N, D)
    w_qkv: (D, 3*heads*dim_head)   -- to_qkv weight, stored (in, out)
    w_out: (heads*dim_head, D) or None (project_out=False -> Identity)
    """
    B, N, D = x.shape
    inner = heads * dim_head
    scale = dim_head ** (-0.5)

    # to_qkv projection (no bias) -- tiled Pallas matmul.
    qkv = linear(x.reshape(B * N, D), w_qkv).reshape(B, N, 3 * inner)

    # Attention reads qkv directly and writes 'b n (h d)' -- no HBM transposes.
    out = attention_core(qkv, heads=heads, dim_head=dim_head, scale=scale)

    if w_out is None:  # project_out=False case (heads==1 and dim_head==dim)
        return out

    # to_out projection; Dropout(p=0.0) is an identity and is skipped.
    y = linear(out.reshape(B * N, inner), w_out)
    return y.reshape(B, N, D)


# Pure-JAX f32 reference mirroring the PyTorch forward, for correctness check.
def attention_ref(x, w_qkv, w_out, *, heads, dim_head):
    B, N, D = x.shape
    inner = heads * dim_head
    scale = dim_head ** (-0.5)
    qkv = x @ w_qkv
    q, k, v = jnp.split(qkv, 3, axis=-1)

    def to_heads(t):
        return t.reshape(B, N, heads, dim_head).transpose(0, 2, 1, 3)

    q, k, v = map(to_heads, (q, k, v))
    dots = jnp.einsum("bhnd,bhmd->bhnm", q, k) * scale
    attn = jax.nn.softmax(dots, axis=-1)
    out = jnp.einsum("bhnm,bhmd->bhnd", attn, v)
    out = out.transpose(0, 2, 1, 3).reshape(B, N, inner)
    return out @ w_out if w_out is not None else out


if __name__ == "__main__":
    # Small shapes consistent with the module's forward (inner lane-aligned).
    B, N, D = 2, 16, 64
    heads, dim_head = 4, 32
    inner = heads * dim_head  # 128

    key = jax.random.PRNGKey(0)
    kx, kq, ko = jax.random.split(key, 3)
    x = jax.random.normal(kx, (B, N, D), dtype=jnp.float32)
    # Deterministic synthetic weights (shapes from nn.Linear in __init__).
    w_qkv = jax.random.normal(kq, (D, 3 * inner), dtype=jnp.float32) * 0.05
    w_out = jax.random.normal(ko, (inner, D), dtype=jnp.float32) * 0.05

    y = attention_forward(x, w_qkv, w_out, heads=heads, dim_head=dim_head)
    y = jax.block_until_ready(y)

    y_ref = attention_ref(x, w_qkv, w_out, heads=heads, dim_head=dim_head)
    # Tolerance accounts for bf16 MXU operands (f32 accumulation kept).
    np.testing.assert_allclose(np.asarray(y), np.asarray(y_ref),
                               rtol=2e-2, atol=2e-2)

    print("KERNEL_OK")
</pallas_src>

<mosaic_0001>
module attributes {stable_mosaic.version = 11 : i64} {
  func.func @_matmul_kernel(%arg0: i32, %arg1: i32, %arg2: i32, %arg3: memref<32x64xf32, #tpu.memory_space<vmem>>, %arg4: memref<64x384xf32, #tpu.memory_space<vmem>>, %arg5: memref<32x384xf32, #tpu.memory_space<vmem>>, %arg6: memref<32x384xf32, #tpu.memory_space<vmem>>) attributes {dimension_semantics = [#tpu.dimension_semantics<parallel>, #tpu.dimension_semantics<parallel>, #tpu.dimension_semantics<arbitrary>], iteration_bounds = array<i64: 1, 1, 1>, scalar_prefetch = 0 : i64, scratch_operands = 1 : i64, tpu.core_type = #tpu.core_type<tc>, window_params = [{transform_indices = @transform_0, window_bounds = array<i64: 32, 64>}, {transform_indices = @transform_1, window_bounds = array<i64: 64, 384>}, {transform_indices = @transform_2, window_bounds = array<i64: 32, 384>}]} {
    %c0_i32 = arith.constant 0 : i32
    %0 = arith.cmpi eq, %arg2, %c0_i32 : i32
    %1 = arith.extui %0 : i1 to i32
    %c0_i32_0 = arith.constant 0 : i32
    %2 = arith.cmpi ne, %1, %c0_i32_0 : i32
    scf.if %2 {
      %cst_10 = arith.constant 0.000000e+00 : f32
      %14 = vector.broadcast %cst_10 : f32 to vector<32x384xf32>
      %c0_11 = arith.constant 0 : index
      %c0_12 = arith.constant 0 : index
      %15 = vector.load %arg6[%c0_11, %c0_12] : memref<32x384xf32, #tpu.memory_space<vmem>>, vector<32x384xf32>
      tpu.vector_store %arg6[%c0_11, %c0_12], %14 {strides = array<i32>} : memref<32x384xf32, #tpu.memory_space<vmem>>, vector<32x384xf32>,
    } else {
    }
    %c0 = arith.constant 0 : index
    %c0_1 = arith.constant 0 : index
    %3 = vector.load %arg6[%c0, %c0_1] : memref<32x384xf32, #tpu.memory_space<vmem>>, vector<32x384xf32>
    %c0_2 = arith.constant 0 : index
    %c0_3 = arith.constant 0 : index
    %4 = vector.load %arg3[%c0_2, %c0_3] : memref<32x64xf32, #tpu.memory_space<vmem>>, vector<32x64xf32>
    %5 = arith.truncf %4 : vector<32x64xf32> to vector<32x64xbf16>
    %c0_4 = arith.constant 0 : index
    %c0_5 = arith.constant 0 : index
    %6 = vector.load %arg4[%c0_4, %c0_5] : memref<64x384xf32, #tpu.memory_space<vmem>>, vector<64x384xf32>
    %7 = arith.truncf %6 : vector<64x384xf32> to vector<64x384xbf16>
    %cst = arith.constant dense<0.000000e+00> : vector<32x384xf32>
    %8 = tpu.matmul %5, %7, %cst {dimension_numbers = #tpu.dot_dimension_numbers<[1], [0], [0], [1], [0, 0, 1, 1], [], []>} : vector<32x64xbf16>, vector<64x384xbf16>, vector<32x384xf32> -> vector<32x384xf32>
    %9 = arith.addf %3, %8 : vector<32x384xf32>
    %c0_6 = arith.constant 0 : index
    %c0_7 = arith.constant 0 : index
    %10 = vector.load %arg6[%c0_6, %c0_7] : memref<32x384xf32, #tpu.memory_space<vmem>>, vector<32x384xf32>
    tpu.vector_store %arg6[%c0_6, %c0_7], %9 {strides = array<i32>} : memref<32x384xf32, #tpu.memory_space<vmem>>, vector<32x384xf32>,
    %c0_i32_8 = arith.constant 0 : i32
    %11 = arith.cmpi eq, %arg2, %c0_i32_8 : i32
    %12 = arith.extui %11 : i1 to i32
    %c0_i32_9 = arith.constant 0 : i32
    %13 = arith.cmpi ne, %12, %c0_i32_9 : i32
    scf.if %13 {
      %c0_10 = arith.constant 0 : index
      %c0_11 = arith.constant 0 : index
      %14 = vector.load %arg6[%c0_10, %c0_11] : memref<32x384xf32, #tpu.memory_space<vmem>>, vector<32x384xf32>
      %c0_12 = arith.constant 0 : index
      %c0_13 = arith.constant 0 : index
      %15 = vector.load %arg5[%c0_12, %c0_13] : memref<32x384xf32, #tpu.memory_space<vmem>>, vector<32x384xf32>
      tpu.vector_store %arg5[%c0_12, %c0_13], %14 {strides = array<i32>} : memref<32x384xf32, #tpu.memory_space<vmem>>, vector<32x384xf32>,
    } else {
    }
    return
  }
  func.func @transform_0(%arg0: i32, %arg1: i32, %arg2: i32) -> (i32, i32) {
    %c0_i32 = arith.constant 0 : i32
    return %arg0, %arg2 : i32, i32
  }
  func.func @transform_1(%arg0: i32, %arg1: i32, %arg2: i32) -> (i32, i32) {
    %c0_i32 = arith.constant 0 : i32
    return %arg2, %arg1 : i32, i32
  }
  func.func @transform_2(%arg0: i32, %arg1: i32, %arg2: i32) -> (i32, i32) {
    %c0_i32 = arith.constant 0 : i32
    return %arg0, %arg1 : i32, i32
  }
}

</mosaic_0001>

<bundles_post_ra>
// kernel: tpu_custom_call.1
= control target key start
LH: loop header
LB: loop body
LE: loop exit
PB: predicated region body
PF: predicated region fallthrough
CT: control target
= control target key end

     0   :  { %7 = vsyncpa [#allocation4], 0  ;;  %s382_s0 = inlined_call_operand.hbm [shape: f32[32,64], index: 0, kind: input, shape index: {}]   ;;  %s383_s1 = inlined_call_operand.hbm [shape: f32[64,384], index: 1, kind: input, shape index: {}]   ;;  %s384_s2 = inlined_call_operand.hbm [shape: f32[32,384], index: 2, kind: output, shape index: {}]  }
   0x1   :  { %8 = vsyncpa [#allocation7], 0 }
   0x2   :  { %9 = vsyncpa [#allocation5], 0  ;;  %s14_s11 = sshll.u32 %s382_s0, 4  ;;  %s345_s12 = smov [#allocation3]   ;;  %s15_s11 = int_to_ptr.hbm [resolvable:$true] %s14_s11 }
   0x3   :  { %s16_s13 = sshll.u32 %s345_s12, 4  ;;  %s27_s16 = sshll.u32 %s383_s1, 4  ;;  %s17_s13 = int_to_ptr.vmem [resolvable:$true] %s16_s13  ;;  %s28_s16 = int_to_ptr.hbm [resolvable:$true] %s27_s16 }
   0x4   :  { %s346_s17 = smov 128   ;;  %s347_s18 = smov 8  }
   0x5   :  { %22 = dma.hbm_to_vmem [thread:$0]  %s15_s11, 512, %s17_s13, [#allocation4], %s346_s17, %s346_s17, %s347_s18  }
   0x6   :  { %s348_s19 = smov [#allocation6]   ;;  %s349_s21 = smov 384  }
   0x7   :  { %s29_s20 = sshll.u32 %s348_s19, 4  ;;  %s350_s22 = smov 24   ;;  %s30_s20 = int_to_ptr.vmem [resolvable:$true] %s29_s20 }
   0x8   :  { %35 = dma.hbm_to_vmem [thread:$0]  %s28_s16, 3072, %s30_s20, [#allocation7], %s349_s21, %s349_s21, %s350_s22  }
   0x9   :  { %339 = dma.done.wait [#allocation4], 512  }
   0xa   :  { %340 = vsyncadd [#allocation4], 4294966784 }
   0xb   :  { %341 = dma.done.wait [#allocation7], 3072  }
   0xc   :  { %342 = vsyncadd [#allocation7], 4294964224  ;;  %v98_v0 = vld [vmem:[#allocation6 + $0x98] sm:$0xff]  ;;  %v101_v1 = vld [vmem:[#allocation6 + $0xb0] sm:$0xff]  ;;  %vm115_vm0 = vcmask 523264   ;;  %s351_s0 = smov [#allocation8]  }
   0xd   :  { %v99_v2 = vld [vmem:[#allocation6 + $0xa0] sm:$0xff]  ;;  %v113_v3 = vpack.c.bf16 %v101_v1, %v98_v0  ;;  %v102_v4 = vld [vmem:[#allocation6 + $0xb8] sm:$0xff]  ;;  %v92_v5 = vld [vmem:[#allocation6 + $0x68] sm:$0xff]  ;;  %s234_s1 = sshll.u32 %s351_s0, 4  ;;  %s236_s25 = sshll.u32 %s384_s2, 4  ;;  %s235_s1 = int_to_ptr.vmem [resolvable:$true] %s234_s1  ;;  %s237_s25 = int_to_ptr.hbm [resolvable:$true] %s236_s25 }
   0xe   :  { %v95_v6 = vld [vmem:[#allocation6 + $0x80] sm:$0xff]  ;;  %v114_v7 = vpack.c.bf16 %v102_v4, %v99_v2  ;;  %v93_v8 = vld [vmem:[#allocation6 + $0x70] sm:$0xff]  ;;  %v96_v9 = vld [vmem:[#allocation6 + $0x88] sm:$0xff] }
   0xf   :  { %v97_v10 = vld [vmem:[#allocation6 + $0x90] sm:$0xff]  ;;  %145 = vmatpush.bf16.msra.mxu1 %v113_v3  ;;  %v110_v11 = vpack.c.bf16 %v95_v6, %v92_v5  ;;  %v100_v12 = vld [vmem:[#allocation6 + $0xa8] sm:$0xff]  ;;  %v111_v13 = vpack.c.bf16 %v96_v9, %v93_v8  ;;  %v86_v15 = vld [vmem:[#allocation6 + $0x38] sm:$0xff] }
  0x10   :  { %164 = vmatpush.bf16.msra.mxu2 %v114_v7  ;;  %v112_v14 = vpack.c.bf16 %v100_v12, %v97_v10  ;;  %v89_v16 = vld [vmem:[#allocation6 + $0x50] sm:$0xff]  ;;  %v91_v17 = vld [vmem:[#allocation6 + $0x60] sm:$0xff]  ;;  %v90_v19 = vld [vmem:[#allocation6 + $0x58] sm:$0xff] }
  0x11   :  { %v87_v18 = vld [vmem:[#allocation6 + $0x40] sm:$0xff]  ;;  %v94_v20 = vld [vmem:[#allocation6 + $0x78] sm:$0xff]  ;;  %v107_v22 = vpack.c.bf16 %v89_v16, %v86_v15  ;;  %v85_v23 = vld [vmem:[#allocation6 + $0x30] sm:$0xff] }
  0x12   :  { %256 = vmatpush.bf16.msra.mxu3 %v112_v14  ;;  %v109_v21 = vpack.c.bf16 %v94_v20, %v91_v17  ;;  %126 = vmatpush.bf16.msra.mxu0 %v112_v14  ;;  %v88_v24 = vld [vmem:[#allocation6 + $0x48] sm:$0xff]  ;;  %v108_v25 = vpack.c.bf16 %v90_v19, %v87_v18  ;;  %v83_v27 = vld [vmem:[#allocation6 + $0x20] sm:$0xff]  ;;  %v81_v28 = vld [vmem:[#allocation6 + $0x10] sm:$0xff] }
  0x13   :  { %146 = vmatpush.bf16.msra.mxu1 %v110_v11  ;;  %v80_v26 = vld [vmem:[#allocation6 + $0x8] sm:$0xff]  ;;  %v73_v30 = vld [vmem:[#allocation3] sm:$0xff]  ;;  %v106_v31 = vpack.c.bf16 %v88_v24, %v85_v23  ;;  %v82_v35 = vld [vmem:[#allocation6 + $0x18] sm:$0xff] }
  0x14   :  { %165 = vmatpush.bf16.msra.mxu2 %v111_v13  ;;  %v84_v29 = vld [vmem:[#allocation6 + $0x28] sm:$0xff]  ;;  %v104_v32 = vpack.c.bf16 %v83_v27, %v80_v26  ;;  %v79_v34 = vld [vmem:[#allocation6] sm:$0xff]  ;;  %v75_v39 = vld [vmem:[#allocation3 + $0x10] sm:$0xff] }
  0x15   :  { %v74_v33 = vld [vmem:[#allocation3 + $0x8] sm:$0xff]  ;;  %v105_v36 = vpack.c.bf16 %v84_v29, %v81_v28  ;;  %v103_v38 = vpack.c.bf16 %v82_v35, %v79_v34  ;;  %v76_v40 = vld [vmem:[#allocation3 + $0x18] sm:$0xff] }
  0x16   :  { %257 = vmatpush.bf16.msra.mxu3 %v109_v21  ;;  %127 = vmatpush.bf16.msra.mxu0 %v109_v21  ;;  %v77_v37 = vpack.c.bf16 %v74_v33, %v73_v30  ;;  %v78_v41 = vpack.c.bf16 %v76_v40, %v75_v39 }
  0x17   :  { %147 = vmatpush.bf16.msra.mxu1 %v107_v22 }
  0x18   :  { %166 = vmatpush.bf16.msra.mxu2 %v108_v25 }
  0x1a   :  { %258 = vmatpush.bf16.msra.mxu3 %v106_v31  ;;  %128 = vmatpush.bf16.msra.mxu0 %v106_v31 }
  0x1b   :  { %148 = vmatpush.bf16.msra.mxu1 %v104_v32 }
  0x1c   :  { %167 = vmatpush.bf16.msra.mxu2 %v105_v36 }
  0x1e   :  { %252 = vmatmul.msk.bf16.vlgmr.msra.gmra.mxu1 %vm115_vm0, %v77_v37  ;;  %259 = vmatpush.bf16.msra.mxu3 %v103_v38 }
  0x1f   :  { %254 = vmatmul.msk.bf16.vlgmr.msra.gmra.mxu2 %vm115_vm0, %v77_v37  ;;  %129 = vmatpush.bf16.msra.mxu0 %v103_v38 }
  0x21   :  { %251 = vmatmul.msk.bf16.vlgmr.msra.gmra.mxu3 %vm115_vm0, %v78_v41 }
  0x22   :  { %250 = vmatmul.msk.bf16.vlgmr.msra.gmra.mxu0 %vm115_vm0, %v77_v37 }
  0x2e   :  { %253 = vmatmul.msk.bf16.gmra.mxu1 %vm115_vm0, %v78_v41 }
  0x2f   :  { %255 = vmatmul.msk.bf16.gmra.mxu2 %vm115_vm0, %v78_v41 }
  0x9b   :  { %v150_v42 = vpop.f32.mrf.mxu1 }
  0x9c   :  { %219 = vst [vmem:[#allocation8 + $0x8] sm:$0xff] %v150_v42 }
  0x9f   :  { %v131_v43 = vpop.f32.mrf.mxu0 }
  0xa0   :  { %218 = vst [vmem:[#allocation8] sm:$0xff] %v131_v43 }
  0xa2   :  { %v169_v44 = vpop.f32.mrf.mxu2 }
  0xa3   :  { %220 = vst [vmem:[#allocation8 + $0x10] sm:$0xff] %v169_v44  ;;  %v152_v45 = vpop.f32.mrf.mxu1 }
  0xa4   :  { %222 = vst [vmem:[#allocation8 + $0x20] sm:$0xff] %v152_v45  ;;  %v136_v46 = vpop.f32.mrf.mxu3 }
  0xa5   :  { %224 = vst [vmem:[#allocation8 + $0x30] sm:$0xff] %v136_v46 }
  0xa7   :  { %v133_v47 = vpop.f32.mrf.mxu0 }
  0xa8   :  { %221 = vst [vmem:[#allocation8 + $0x18] sm:$0xff] %v133_v47 }
  0xaa   :  { %v171_v48 = vpop.f32.mrf.mxu2 }
  0xab   :  { %223 = vst [vmem:[#allocation8 + $0x28] sm:$0xff] %v171_v48  ;;  %v155_v49 = vpop.f32.mrf.mxu1 }
  0xac   :  { %225 = vst [vmem:[#allocation8 + $0x38] sm:$0xff] %v155_v49  ;;  %v138_v50 = vpop.f32.mrf.mxu3 }
  0xad   :  { %227 = vst [vmem:[#allocation8 + $0x48] sm:$0xff] %v138_v50 }
  0xb2   :  { %v174_v51 = vpop.f32.mrf.mxu2 }
  0xb3   :  { %226 = vst [vmem:[#allocation8 + $0x40] sm:$0xff] %v174_v51  ;;  %v157_v52 = vpop.f32.mrf.mxu1 }
  0xb4   :  { %228 = vst [vmem:[#allocation8 + $0x50] sm:$0xff] %v157_v52 }
  0xba   :  { %v176_v53 = vpop.f32.mrf.mxu2 }
  0xbb   :  { %229 = vst [vmem:[#allocation8 + $0x58] sm:$0xff] %v176_v53 }
  0xbc   :  { %242 = dma.vmem_to_hbm [thread:$0]  %s235_s1, 1536, %s237_s25, [#allocation5], %s349_s21, %s349_s21, %s350_s22  }
  0xbd   :  { %343 = dma.done.wait [#allocation5], 1536  }
  0xbe   :  { %344 = vsyncadd [#allocation5], 4294965760 }
  0xbf   :  { %247 = vsyncpa [#allocation4], 1 }
  0xc0   :  { %248 = vsyncpa [#allocation7], 1 }
  0xc1   :  { %249 = vsyncpa [#allocation5], 1 }

</bundles_post_ra>
